<compile_context>
chip_gen: v5e
topology: v5e:2x2
jax: 0.10.0
libtpu: 0.0.40
codegen_flags: <defaults>
</compile_context>

<pallas_src>
import numpy as np
import jax
import jax.numpy as jnp
from jax.experimental import pallas as pl
from jax.experimental.pallas import tpu as pltpu

_MiB = 1024 * 1024


def _copy_kernel(x_ref, o_ref):
    # Identity copy of the current tile (HBM<->VMEM DMA handled by BlockSpec).
    o_ref[...] = x_ref[...]


def _vmem_budget():
    """Per-generation (target_tile_bytes, vmem_limit_bytes).

    v5e/v6e have 128 MiB VMEM per TensorCore -> larger tiles shave a little
    more per-grid-step overhead. v7x has only 64 MiB -> keep the proven 4 MiB
    tiles (per-step overhead already <~10%) and a tight scoped limit.
    """
    try:
        cap = pltpu.get_tpu_info().vmem_capacity_bytes
    except Exception:
        cap = 64 * _MiB
    if cap >= 96 * _MiB:            # 128 MiB parts (v5e / v6e)
        tile = 8 * _MiB             # 2 in + 2 out double-buffered ~= 32 MiB
    else:                           # v7x (64 MiB) or unknown
        tile = 4 * _MiB             # ~16 MiB pipelined
    # double-buffered input+output tiles plus headroom for Mosaic scratch
    limit = 4 * tile + 8 * _MiB
    return tile, limit


def _pallas_copy_2d(x2d, donate=False):
    """Tiled, lane-dense identity copy of a (R, L) slab through a Pallas kernel.

    L must be a multiple of 128. If donate=True, the output aliases the input
    HBM buffer (caller must treat the input as consumed).
    """
    R, L = x2d.shape
    itemsize = x2d.dtype.itemsize
    target_tile_bytes, vmem_limit = _vmem_budget()

    # Rows per tile: multiple of 32 rows -> native packed tiles for f32 (8),
    # bf16 (16), int8 (32) sublane layouts.
    tile_rows = (target_tile_bytes // (L * itemsize) // 32) * 32

    if R > 64:
        # Guarantee grid >= 2 so the "parallel" row axis is actually sharded
        # across v7x's two TensorCores: clamp to round_up(cdiv(R, 2), 32).
        half = 32 * pl.cdiv(pl.cdiv(R, 2), 32)
        tile_rows = max(32, min(tile_rows, half)) if tile_rows > 0 else half
    if tile_rows <= 0 or tile_rows > R:
        # Tiny slab: one full-extent block (full array dims are always legal).
        tile_rows = R

    grid = (pl.cdiv(R, tile_rows),)  # partial last block is masked by Pallas

    return pl.pallas_call(
        _copy_kernel,
        out_shape=jax.ShapeDtypeStruct((R, L), x2d.dtype),
        grid_spec=pltpu.PrefetchScalarGridSpec(
            num_scalar_prefetch=0,
            grid=grid,
            in_specs=[pl.BlockSpec((tile_rows, L), lambda i: (i, 0))],
            out_specs=pl.BlockSpec((tile_rows, L), lambda i: (i, 0)),
        ),
        compiler_params=pltpu.CompilerParams(
            # v7x shards this axis across its 2 TensorCores; harmless on
            # single-TC v5e/v6e.
            dimension_semantics=("parallel",),
            vmem_limit_bytes=vmem_limit,
        ),
        cost_estimate=pl.CostEstimate(
            flops=0,
            transcendentals=0,
            bytes_accessed=2 * R * L * itemsize,
        ),
        input_output_aliases=({0: 0} if donate else {}),
    )(x2d)


class Reshape:
    """JAX/Pallas equivalent of the PyTorch Reshape module.

    forward(x) = x.view(-1, *shape).  materialize=False is the documented fast
    path (pure metadata reshape, zero HBM traffic); the default runs the Pallas
    streaming copy kernel.
    """

    _LANE_CANDIDATES = (1024, 896, 768, 640, 512, 384, 256, 128)

    def __init__(self, shape, materialize=True, donate=False):
        self.shape = tuple(int(s) for s in shape)
        self.materialize = materialize
        # donate=True: kernel output aliases the (flattened) input buffer; the
        # caller must not reuse the input afterwards.
        self.donate = donate

    def __call__(self, x):
        total = int(np.prod(x.shape)) if x.ndim else 1
        tail = int(np.prod(self.shape)) if self.shape else 1
        assert tail > 0 and total % tail == 0, "input not compatible with target shape"
        out_shape = (total // tail,) + self.shape

        if not self.materialize:
            # Contiguous view == pure reshape: no data movement at all.
            return jnp.reshape(x, out_shape)

        # Widest lane width (multiple of 128) dividing the element count ->
        # wide unmasked stores and long contiguous DMA rows.
        lanes = next((c for c in self._LANE_CANDIDATES if total % c == 0), 0)
        if not lanes:
            # Ragged element count: no lane-dense layout exists. A contiguous
            # reshape needs no data movement, and the old pad+slice dance only
            # added 1-2 extra full-array HBM passes -> use the metadata view.
            return jnp.reshape(x, out_shape)

        x2d = jnp.reshape(x, (total // lanes, lanes))      # metadata-only glue
        out2d = _pallas_copy_2d(x2d, donate=self.donate)
        return jnp.reshape(out2d, out_shape)               # final (-1, *shape) view


if __name__ == "__main__":
    key = jax.random.PRNGKey(0)

    # 1) NCHW input (2, 4, 16, 16) reshaped with shape=(4, 16, 16): leading dim
    #    inferred -> (2, 4, 16, 16).  Single full-extent block path.
    x = jax.random.normal(key, (2, 4, 16, 16), dtype=jnp.float32)
    mod = Reshape(shape=(4, 16, 16))
    y = jax.block_until_ready(mod(x))
    ref = jnp.reshape(x, (-1, 4, 16, 16))
    assert y.shape == ref.shape and y.dtype == ref.dtype, (y.shape, ref.shape)
    np.testing.assert_array_equal(np.asarray(y), np.asarray(ref))

    # 2) Flatten-style use with bf16 to exercise the sub-32-bit / wide-lane path.
    xb = jax.random.normal(jax.random.PRNGKey(1), (2, 4, 8, 32), dtype=jnp.bfloat16)
    modb = Reshape(shape=(256,))
    yb = jax.block_until_ready(modb(xb))
    refb = jnp.reshape(xb, (-1, 256))
    assert yb.shape == refb.shape and yb.dtype == refb.dtype
    np.testing.assert_array_equal(
        np.asarray(yb.astype(jnp.float32)), np.asarray(refb.astype(jnp.float32)))

    # 3) Larger slab (8, 4, 48, 48): 73728 elements -> (72, 1024) slab, row-axis
    #    clamp kicks in, grid >= 2 (multi-program parallel path + masked tail).
    xm = jax.random.normal(jax.random.PRNGKey(3), (8, 4, 48, 48), dtype=jnp.float32)
    modm = Reshape(shape=(4, 48, 48))
    ym = jax.block_until_ready(modm(xm))
    refm = jnp.reshape(xm, (-1, 4, 48, 48))
    assert ym.shape == refm.shape and ym.dtype == refm.dtype
    np.testing.assert_array_equal(np.asarray(ym), np.asarray(refm))

    # 4) Ragged element count (105, not a multiple of 128): metadata-only
    #    fallback (no pad/slice HBM passes).
    xr = jax.random.normal(jax.random.PRNGKey(2), (3, 5, 7), dtype=jnp.float32)
    modr = Reshape(shape=(35,))
    yr = jax.block_until_ready(modr(xr))
    refr = jnp.reshape(xr, (-1, 35))
    assert yr.shape == refr.shape and yr.dtype == refr.dtype
    np.testing.assert_array_equal(np.asarray(yr), np.asarray(refr))

    # 5) Documented fast path (pure metadata reshape).
    yf = jax.block_until_ready(Reshape(shape=(4, 16, 16), materialize=False)(x))
    np.testing.assert_array_equal(np.asarray(yf), np.asarray(ref))

    print("KERNEL_OK")
</pallas_src>

<mosaic_0001>
module attributes {stable_mosaic.version = 11 : i64} {
  func.func @_copy_kernel(%arg0: i32, %arg1: memref<2x1024xf32, #tpu.memory_space<vmem>>, %arg2: memref<2x1024xf32, #tpu.memory_space<vmem>>) attributes {dimension_semantics = [#tpu.dimension_semantics<parallel>], iteration_bounds = array<i64: 1>, scalar_prefetch = 0 : i64, scratch_operands = 0 : i64, tpu.core_type = #tpu.core_type<tc>, window_params = [{transform_indices = @transform_0, window_bounds = array<i64: 2, 1024>}, {transform_indices = @transform_1, window_bounds = array<i64: 2, 1024>}]} {
    %c0 = arith.constant 0 : index
    %c0_0 = arith.constant 0 : index
    %0 = vector.load %arg1[%c0, %c0_0] : memref<2x1024xf32, #tpu.memory_space<vmem>>, vector<2x1024xf32>
    %c0_1 = arith.constant 0 : index
    %c0_2 = arith.constant 0 : index
    %1 = vector.load %arg2[%c0_1, %c0_2] : memref<2x1024xf32, #tpu.memory_space<vmem>>, vector<2x1024xf32>
    tpu.vector_store %arg2[%c0_1, %c0_2], %0 {strides = array<i32>} : memref<2x1024xf32, #tpu.memory_space<vmem>>, vector<2x1024xf32>,
    return
  }
  func.func @transform_0(%arg0: i32) -> (i32, i32) {
    %c0_i32 = arith.constant 0 : i32
    %c0_i32_0 = arith.constant 0 : i32
    return %arg0, %c0_i32 : i32, i32
  }
  func.func @transform_1(%arg0: i32) -> (i32, i32) {
    %c0_i32 = arith.constant 0 : i32
    %c0_i32_0 = arith.constant 0 : i32
    return %arg0, %c0_i32 : i32, i32
  }
}

</mosaic_0001>

<bundles_post_ra>
// kernel: tpu_custom_call.1
= control target key start
LH: loop header
LB: loop body
LE: loop exit
PB: predicated region body
PF: predicated region fallthrough
CT: control target
= control target key end

     0   :  { %6 = vsyncpa [#allocation3], 0  ;;  %s116_s0 = inlined_call_operand.hbm [shape: f32[2,1024], index: 0, kind: input, shape index: {}]   ;;  %s117_s1 = inlined_call_operand.hbm [shape: f32[2,1024], index: 1, kind: output, shape index: {}]  }
   0x1   :  { %7 = vsyncpa [#allocation4], 0  ;;  %s13_s8 = sshll.u32 %s116_s0, 4  ;;  %s98_s9 = smov [#allocation2]   ;;  %s14_s8 = int_to_ptr.hbm [resolvable:$true] %s13_s8 }
   0x2   :  { %s15_s10 = sshll.u32 %s98_s9, 4  ;;  %s16_s10 = int_to_ptr.vmem [resolvable:$true] %s15_s10 }
   0x3   :  { %18 = dma.hbm_to_vmem [thread:$0]  %s14_s8, 256, %s16_s10, [#allocation3]  }
   0x4   :  { %94 = dma.done.wait [#allocation3], 256  }
   0x5   :  { %95 = vsyncadd [#allocation3], 4294967040  ;;  %s99_s11 = smov [#allocation5]   ;;  %s34_s15 = sshll.u32 %s117_s1, 4  ;;  %v23_v0 = vld [vmem:[#allocation2] sm:$0xff]  ;;  %v24_v1 = vld [vmem:[#allocation2 + $0x8] sm:$0xff]  ;;  %s35_s15 = int_to_ptr.hbm [resolvable:$true] %s34_s15 }
   0x6   :  { %s32_s12 = sshll.u32 %s99_s11, 4  ;;  %25 = vst [vmem:[#allocation5] sm:$0xff] %v23_v0  ;;  %s33_s12 = int_to_ptr.vmem [resolvable:$true] %s32_s12 }
   0x7   :  { %26 = vst [vmem:[#allocation5 + $0x8] sm:$0xff] %v24_v1 }
   0x8   :  { %37 = dma.vmem_to_hbm [thread:$0]  %s33_s12, 256, %s35_s15, [#allocation4]  }
   0x9   :  { %96 = dma.done.wait [#allocation4], 256  }
   0xa   :  { %97 = vsyncadd [#allocation4], 4294967040 }
   0xb   :  { %42 = vsyncpa [#allocation3], 1 }
   0xc   :  { %43 = vsyncpa [#allocation4], 1 }

</bundles_post_ra>
